<compile_context>
chip_gen: v6e
topology: v6e:2x2x1
jax: 0.10.0
libtpu: 0.0.40
codegen_flags: <defaults>
</compile_context>

<pallas_src>
import math

import jax
import jax.numpy as jnp
import numpy as np
from jax.experimental import pallas as pl
from jax.experimental.pallas import tpu as pltpu

EPS = 1e-5

# Only bother single-buffering grid-invariant operands once they are big enough
# to actually matter for VMEM (e.g. Swin stage-3 merges); tiny weights keep the
# plain (known-good) double-buffered path.
_SINGLE_BUF_MIN_BYTES = 1 * 1024 * 1024


def _invariant_spec(shape, single_buffer):
    """BlockSpec for a grid-invariant operand (constant index_map).

    The constant block index already elides the per-step DMA; for large
    operands we also request a single VMEM buffer so the second (never used)
    buffer does not eat into the row-tile budget.
    """
    idx_map = lambda i: (0,) * len(shape)
    if single_buffer and hasattr(pl, "Buffered"):
        try:
            return pl.BlockSpec(shape, idx_map, pipeline_mode=pl.Buffered(1))
        except TypeError:  # jax version without pipeline_mode on BlockSpec
            pass
    return pl.BlockSpec(shape, idx_map)


def _merge_kernel(x_ref, we_ref, wo_ref, bias_ref, o_ref):
    # x_ref  : (tr1, 2, W2, 2C)  combined block; [:,0] = h-even rows ([x0|x2]),
    #                            [:,1] = h-odd rows ([x1|x3])
    # we/wo  : (2C, N)   permuted halves of diag(gamma) @ W^T   (model dtype)
    # bias   : (1, N) f32 == beta @ W^T
    # o_ref  : (tr1 * W2, N)
    tr1, _, w2, c2 = x_ref.shape
    rows = tr1 * w2
    inv_c4 = 1.0 / (2 * c2)

    x = x_ref[...]
    xe = x[:, 0].astype(jnp.float32)          # (tr1, W2, 2C)
    xo = x[:, 1].astype(jnp.float32)

    # LayerNorm stats over the full 4C channel, computed on the 3-D tiles
    # (no relayout); E[x^2] - mean^2 lets the four reductions overlap on the XLU.
    s1 = jnp.sum(xe, axis=-1, keepdims=True) + jnp.sum(xo, axis=-1, keepdims=True)
    s2 = (jnp.sum(xe * xe, axis=-1, keepdims=True)
          + jnp.sum(xo * xo, axis=-1, keepdims=True))
    mean = s1 * inv_c4
    var = s2 * inv_c4 - mean * mean
    rstd = jax.lax.rsqrt(var + EPS)

    # Normalize (gamma/beta are folded into we/wo/bias), cast to the dot dtype
    # first so the (tr1, W2, 2C) -> (rows, 2C) flatten moves the narrower dtype,
    # then two accumulating MXU dots into one f32 accumulator.
    ye = ((xe - mean) * rstd).astype(we_ref.dtype).reshape(rows, c2)
    yo = ((xo - mean) * rstd).astype(wo_ref.dtype).reshape(rows, c2)

    acc = jnp.dot(ye, we_ref[...], preferred_element_type=jnp.float32)
    acc = acc + jnp.dot(yo, wo_ref[...], preferred_element_type=jnp.float32)
    o_ref[...] = (acc + bias_ref[...]).astype(o_ref.dtype)


def patch_merging_forward(x, H, W, gamma, beta, w_t, *,
                          vmem_budget_bytes=24 * 1024 * 1024):
    """x: (B, H*W, C) -> (B, H*W//4, 2C).  w_t: (4C, 2C) == reduction.weight.T."""
    B, L, C = x.shape
    assert L == H * W, "input feature has wrong size"
    assert H % 2 == 0 and W % 2 == 0, f"x size ({H}*{W}) are not even."
    H2, W2 = H // 2, W // 2
    C2, C4 = 2 * C, 4 * C
    N = 2 * C                       # output features (== C2)
    R = B * H2                      # outer merged-row factor (b, h/2)
    rows = R * W2                   # total merged tokens
    itemsize = x.dtype.itemsize

    # Free view (contiguous reshape): (B, H*W, C) -> (B*H/2, 2, W/2, 2C).
    # Last axis is [C channels at w-even | C channels at w-odd].
    x5 = x.reshape(R, 2, W2, C2)

    # Kernel channel order per parity slab: h-even -> [x0|x2], h-odd -> [x1|x3].
    # Permute + gamma-fold the reduction weight so the math equals PyTorch's
    # reduction(norm(concat[x0,x1,x2,x3])); beta is folded into an output bias.
    perm_e = np.concatenate([np.arange(0, C), np.arange(2 * C, 3 * C)])
    perm_o = np.concatenate([np.arange(C, 2 * C), np.arange(3 * C, 4 * C)])
    g = jnp.asarray(gamma, jnp.float32).reshape(C4)
    b = jnp.asarray(beta, jnp.float32).reshape(C4)
    wt = jnp.asarray(w_t, jnp.float32)                 # (4C, 2C)
    wt_g = wt * g[:, None]                             # diag(gamma) @ W^T
    we = wt_g[perm_e, :].astype(x.dtype)               # (2C, N) model dtype -> MXU
    wo = wt_g[perm_o, :].astype(x.dtype)
    bias = (b[None, :] @ wt).astype(jnp.float32)       # (1, N) == beta @ W^T

    # ---------------- VMEM accounting & row-tile sizing ----------------------
    weights_bytes = 2 * C2 * N * itemsize
    single_buffer = weights_bytes >= _SINGLE_BUF_MIN_BYTES
    n_w_bufs = 1 if single_buffer else 2
    fixed_bytes = n_w_bufs * (weights_bytes + N * 4)   # we + wo + bias
    # Per outer merged row (one tr1 unit):
    per_row_bytes = W2 * (
        2 * (2 * C2) * itemsize       # input block, double-buffered
        + 2 * N * itemsize            # output block, double-buffered
        + (2 * C2 + N) * 4            # f32 temps: xe, xo, acc
        + 2 * (2 * C2) * itemsize     # ye/yo casts + flatten relayout copies
    )
    avail = max(vmem_budget_bytes - fixed_bytes, per_row_bytes)
    tr1 = max(1, min(R, avail // per_row_bytes))
    # v7x megacore: keep at least 2 grid steps so both TensorCores get work.
    if R >= 2:
        tr1 = min(tr1, (R + 1) // 2)
    # dtype-aware output-row alignment: tile_rows = tr1*W2 should be a multiple
    # of the packed sublane tile (8 f32 / 16 bf16 / 32 int8) unless it spans
    # all rows.
    sub = max(8, 32 // itemsize)
    m = sub // math.gcd(W2, sub)
    if tr1 < R:
        if tr1 >= m:
            tr1 = (tr1 // m) * m
        else:
            m8 = 8 // math.gcd(W2, 8)        # hard (...,8,128) divisibility
            tr1 = min(R, ((tr1 + m8 - 1) // m8) * m8)
    tile_rows = tr1 * W2
    grid = (pl.cdiv(R, tr1),)

    vmem_est = fixed_bytes + tr1 * per_row_bytes
    vmem_limit_bytes = int(min(56 * 1024 * 1024,
                               max(16 * 1024 * 1024,
                                   int(1.3 * vmem_est) + (2 << 20))))

    cost = pl.CostEstimate(
        flops=2 * rows * C4 * N + 8 * rows * C4,
        transcendentals=rows,
        bytes_accessed=(rows * C4 + rows * N + C4 * N) * itemsize,
    )

    out = pl.pallas_call(
        _merge_kernel,
        out_shape=jax.ShapeDtypeStruct((rows, N), x.dtype),
        grid_spec=pltpu.PrefetchScalarGridSpec(
            num_scalar_prefetch=0,
            grid=grid,
            in_specs=[
                # One contiguous (tr1, 2, W2, 2C) slab per grid step.
                pl.BlockSpec((tr1, 2, W2, C2), lambda i: (i, 0, 0, 0)),
                _invariant_spec((C2, N), single_buffer),   # we (gamma-folded)
                _invariant_spec((C2, N), single_buffer),   # wo (gamma-folded)
                _invariant_spec((1, N), single_buffer),    # bias = beta @ W^T
            ],
            out_specs=pl.BlockSpec((tile_rows, N), lambda i: (i, 0)),
        ),
        compiler_params=pltpu.CompilerParams(
            dimension_semantics=("parallel",),
            vmem_limit_bytes=vmem_limit_bytes,
        ),
        cost_estimate=cost,
    )(x5, we, wo, bias)

    return out.reshape(B, L // 4, N)


def _reference(x, H, W, gamma, beta, w_t):
    B, L, C = x.shape
    xhw = x.reshape(B, H, W, C)
    x0 = xhw[:, 0::2, 0::2, :]
    x1 = xhw[:, 1::2, 0::2, :]
    x2 = xhw[:, 0::2, 1::2, :]
    x3 = xhw[:, 1::2, 1::2, :]
    xm = jnp.concatenate([x0, x1, x2, x3], axis=-1).reshape(B, L // 4, 4 * C)
    mean = jnp.mean(xm, axis=-1, keepdims=True)
    var = jnp.mean((xm - mean) ** 2, axis=-1, keepdims=True)
    xn = (xm - mean) * jax.lax.rsqrt(var + EPS) * gamma + beta
    return xn @ w_t


if __name__ == "__main__":
    B, H, W, C = 2, 16, 16, 4            # input_resolution=(16,16), dim=4
    key = jax.random.PRNGKey(0)
    kx, kw, kg, kb = jax.random.split(key, 4)

    x = jax.random.normal(kx, (B, H * W, C), dtype=jnp.float32)

    # Parameters (shapes from the module's __init__); non-trivial LN affine to
    # exercise the permutation / folding path.
    gamma = 1.0 + 0.1 * jax.random.normal(kg, (4 * C,), dtype=jnp.float32)
    beta = 0.1 * jax.random.normal(kb, (4 * C,), dtype=jnp.float32)
    # nn.Linear(4*dim, 2*dim, bias=False): weight (2C, 4C); we pass its transpose.
    w = jax.random.normal(kw, (2 * C, 4 * C), dtype=jnp.float32) * 0.05
    w_t = w.T

    fwd = jax.jit(patch_merging_forward, static_argnums=(1, 2))
    out = jax.block_until_ready(fwd(x, H, W, gamma, beta, w_t))

    ref = _reference(x, H, W, gamma, beta, w_t)
    assert out.shape == (B, H * W // 4, 2 * C)
    err = float(jnp.max(jnp.abs(out - ref)))
    assert jnp.allclose(out, ref, atol=2e-4, rtol=2e-4), err
    print("KERNEL_OK")
</pallas_src>

<mosaic_0001>
module attributes {stable_mosaic.version = 11 : i64} {
  func.func @_merge_kernel(%arg0: i32, %arg1: memref<8x2x8x8xf32, #tpu.memory_space<vmem>>, %arg2: memref<8x8xf32, #tpu.memory_space<vmem>>, %arg3: memref<8x8xf32, #tpu.memory_space<vmem>>, %arg4: memref<1x8xf32, #tpu.memory_space<vmem>>, %arg5: memref<64x8xf32, #tpu.memory_space<vmem>>) attributes {dimension_semantics = [#tpu.dimension_semantics<parallel>], iteration_bounds = array<i64: 2>, scalar_prefetch = 0 : i64, scratch_operands = 0 : i64, tpu.core_type = #tpu.core_type<tc>, window_params = [{transform_indices = @transform_0, window_bounds = array<i64: 8, 2, 8, 8>}, {pipeline_mode = #tpu.pipeline_mode<synchronous>, transform_indices = @transform_1, window_bounds = array<i64: 8, 8>}, {pipeline_mode = #tpu.pipeline_mode<synchronous>, transform_indices = @transform_2, window_bounds = array<i64: 8, 8>}, {pipeline_mode = #tpu.pipeline_mode<synchronous>, transform_indices = @transform_3, window_bounds = array<i64: 1, 8>}, {transform_indices = @transform_4, window_bounds = array<i64: 64, 8>}]} {
    %c0 = arith.constant 0 : index
    %c0_0 = arith.constant 0 : index
    %c0_1 = arith.constant 0 : index
    %c0_2 = arith.constant 0 : index
    %0 = vector.load %arg1[%c0, %c0_0, %c0_1, %c0_2] : memref<8x2x8x8xf32, #tpu.memory_space<vmem>>, vector<8x2x8x8xf32>
    %1 = vector.extract_strided_slice %0 {offsets = [0, 0, 0, 0], sizes = [8, 1, 8, 8], strides = [1, 1, 1, 1]} : vector<8x2x8x8xf32> to vector<8x1x8x8xf32>
    %2 = vector.shape_cast %1 : vector<8x1x8x8xf32> to vector<8x8x8xf32>
    %3 = vector.extract_strided_slice %0 {offsets = [0, 1, 0, 0], sizes = [8, 1, 8, 8], strides = [1, 1, 1, 1]} : vector<8x2x8x8xf32> to vector<8x1x8x8xf32>
    %4 = vector.shape_cast %3 : vector<8x1x8x8xf32> to vector<8x8x8xf32>
    %cst = arith.constant dense<0.000000e+00> : vector<8x8xf32>
    %5 = vector.multi_reduction <add>, %2, %cst [2] : vector<8x8x8xf32> to vector<8x8xf32>
    %6 = vector.shape_cast %5 : vector<8x8xf32> to vector<8x8x1xf32>
    %cst_3 = arith.constant dense<0.000000e+00> : vector<8x8xf32>
    %7 = vector.multi_reduction <add>, %4, %cst_3 [2] : vector<8x8x8xf32> to vector<8x8xf32>
    %8 = vector.shape_cast %7 : vector<8x8xf32> to vector<8x8x1xf32>
    %9 = arith.addf %6, %8 : vector<8x8x1xf32>
    %10 = arith.mulf %2, %2 : vector<8x8x8xf32>
    %cst_4 = arith.constant dense<0.000000e+00> : vector<8x8xf32>
    %11 = vector.multi_reduction <add>, %10, %cst_4 [2] : vector<8x8x8xf32> to vector<8x8xf32>
    %12 = vector.shape_cast %11 : vector<8x8xf32> to vector<8x8x1xf32>
    %13 = arith.mulf %4, %4 : vector<8x8x8xf32>
    %cst_5 = arith.constant dense<0.000000e+00> : vector<8x8xf32>
    %14 = vector.multi_reduction <add>, %13, %cst_5 [2] : vector<8x8x8xf32> to vector<8x8xf32>
    %15 = vector.shape_cast %14 : vector<8x8xf32> to vector<8x8x1xf32>
    %16 = arith.addf %12, %15 : vector<8x8x1xf32>
    %cst_6 = arith.constant 6.250000e-02 : f32
    %17 = vector.broadcast %cst_6 : f32 to vector<8x8x1xf32>
    %18 = arith.mulf %9, %17 : vector<8x8x1xf32>
    %cst_7 = arith.constant 6.250000e-02 : f32
    %19 = vector.broadcast %cst_7 : f32 to vector<8x8x1xf32>
    %20 = arith.mulf %16, %19 : vector<8x8x1xf32>
    %21 = arith.mulf %18, %18 : vector<8x8x1xf32>
    %22 = arith.subf %20, %21 : vector<8x8x1xf32>
    %cst_8 = arith.constant 9.99999974E-6 : f32
    %23 = vector.broadcast %cst_8 : f32 to vector<8x8x1xf32>
    %24 = arith.addf %22, %23 : vector<8x8x1xf32>
    %25 = math.rsqrt %24 : vector<8x8x1xf32>
    %26 = vector.broadcast %18 : vector<8x8x1xf32> to vector<8x8x8xf32>
    %27 = arith.subf %2, %26 : vector<8x8x8xf32>
    %28 = vector.broadcast %25 : vector<8x8x1xf32> to vector<8x8x8xf32>
    %29 = arith.mulf %27, %28 : vector<8x8x8xf32>
    %30 = vector.shape_cast %29 : vector<8x8x8xf32> to vector<64x8xf32>
    %31 = vector.broadcast %18 : vector<8x8x1xf32> to vector<8x8x8xf32>
    %32 = arith.subf %4, %31 : vector<8x8x8xf32>
    %33 = vector.broadcast %25 : vector<8x8x1xf32> to vector<8x8x8xf32>
    %34 = arith.mulf %32, %33 : vector<8x8x8xf32>
    %35 = vector.shape_cast %34 : vector<8x8x8xf32> to vector<64x8xf32>
    %c0_9 = arith.constant 0 : index
    %c0_10 = arith.constant 0 : index
    %36 = vector.load %arg2[%c0_9, %c0_10] : memref<8x8xf32, #tpu.memory_space<vmem>>, vector<8x8xf32>
    %cst_11 = arith.constant dense<0.000000e+00> : vector<64x8xf32>
    %37 = tpu.matmul %30, %36, %cst_11 {dimension_numbers = #tpu.dot_dimension_numbers<[1], [0], [0], [1], [0, 0, 1, 1], [], []>} : vector<64x8xf32>, vector<8x8xf32>, vector<64x8xf32> -> vector<64x8xf32>
    %c0_12 = arith.constant 0 : index
    %c0_13 = arith.constant 0 : index
    %38 = vector.load %arg3[%c0_12, %c0_13] : memref<8x8xf32, #tpu.memory_space<vmem>>, vector<8x8xf32>
    %cst_14 = arith.constant dense<0.000000e+00> : vector<64x8xf32>
    %39 = tpu.matmul %35, %38, %cst_14 {dimension_numbers = #tpu.dot_dimension_numbers<[1], [0], [0], [1], [0, 0, 1, 1], [], []>} : vector<64x8xf32>, vector<8x8xf32>, vector<64x8xf32> -> vector<64x8xf32>
    %40 = arith.addf %37, %39 : vector<64x8xf32>
    %c0_15 = arith.constant 0 : index
    %c0_16 = arith.constant 0 : index
    %41 = vector.load %arg4[%c0_15, %c0_16] : memref<1x8xf32, #tpu.memory_space<vmem>>, vector<1x8xf32>
    %42 = vector.broadcast %41 : vector<1x8xf32> to vector<64x8xf32>
    %43 = arith.addf %40, %42 : vector<64x8xf32>
    %c0_17 = arith.constant 0 : index
    %c0_18 = arith.constant 0 : index
    %44 = vector.load %arg5[%c0_17, %c0_18] : memref<64x8xf32, #tpu.memory_space<vmem>>, vector<64x8xf32>
    tpu.vector_store %arg5[%c0_17, %c0_18], %43 {strides = array<i32>} : memref<64x8xf32, #tpu.memory_space<vmem>>, vector<64x8xf32>,
    return
  }
  func.func @transform_0(%arg0: i32) -> (i32, i32, i32, i32) {
    %c0_i32 = arith.constant 0 : i32
    %c0_i32_0 = arith.constant 0 : i32
    %c0_i32_1 = arith.constant 0 : i32
    %c0_i32_2 = arith.constant 0 : i32
    return %arg0, %c0_i32, %c0_i32_0, %c0_i32_1 : i32, i32, i32, i32
  }
  func.func @transform_1(%arg0: i32) -> (i32, i32) {
    %c0_i32 = arith.constant 0 : i32
    %c0_i32_0 = arith.constant 0 : i32
    %c0_i32_1 = arith.constant 0 : i32
    return %c0_i32, %c0_i32_0 : i32, i32
  }
  func.func @transform_2(%arg0: i32) -> (i32, i32) {
    %c0_i32 = arith.constant 0 : i32
    %c0_i32_0 = arith.constant 0 : i32
    %c0_i32_1 = arith.constant 0 : i32
    return %c0_i32, %c0_i32_0 : i32, i32
  }
  func.func @transform_3(%arg0: i32) -> (i32, i32) {
    %c0_i32 = arith.constant 0 : i32
    %c0_i32_0 = arith.constant 0 : i32
    %c0_i32_1 = arith.constant 0 : i32
    return %c0_i32, %c0_i32_0 : i32, i32
  }
  func.func @transform_4(%arg0: i32) -> (i32, i32) {
    %c0_i32 = arith.constant 0 : i32
    %c0_i32_0 = arith.constant 0 : i32
    return %arg0, %c0_i32 : i32, i32
  }
}

</mosaic_0001>

<bundles_post_ra>
// kernel: patch_merging_forward.1
= control target key start
LH: loop header
LB: loop body
LE: loop exit
PB: predicated region body
PF: predicated region fallthrough
CT: control target
= control target key end

     0   :  { %s901_s15 = smov 0   ;;  %s1123_s0 = inlined_call_operand.vmem [shape: f32[16,2,8,8], index: 0, kind: input, shape index: {}]   ;;  %s1124_s1 = inlined_call_operand.vmem [shape: f32[8,8], index: 1, kind: input, shape index: {}]   ;;  %s1125_s2 = inlined_call_operand.vmem [shape: f32[8,8], index: 2, kind: input, shape index: {}]   ;;  %s1126_s3 = inlined_call_operand.vmem [shape: f32[1,8], index: 3, kind: input, shape index: {}]   ;;  %s1127_s4 = inlined_call_operand.vmem [shape: f32[128,8], index: 4, kind: output, shape index: {}]  }
   0x1 LB: > { %s768_s16 = sadd.s32 4294967295, %s874_s15   ;;  %p772_p0 = scmp.ge.s32.totalorder %s874_s15, 1  ;;  %s874_s15 = sphi %s901_s15, %s14_s15  }
   0x2   : > { %p164_p1 = scmp.lt.s32.totalorder %s874_s15, 3 }
   0x4   : > { %p165_p2 = pnand %p772_p0, %p164_p1 }
   0x5   : > { %s773_s17 = sshll.u32 (!%p165_p2), %s768_s16, 3 }
   0x6   : > { %168 = sbr.rel (%p165_p2) target bundleno = 438 (0x1b6), region = 36  ;;  %p192_p3 = scmp.lt.s32.totalorder (!%p165_p2), %s773_s17, 15 }
   0xb   : > { %s1129_s17 = smov (!%p192_p3, %s773_s17), 15  ;;  %vm220_vm0 = vcmask 64512   ;;  %v430_v50 = vld [vmem:[%s1125_s2] sm:$0xff] }
   0xc   : > { %s797_s18 = sshll.u32 %s1129_s17, 4  ;;  %v429_v51 = vld [vmem:[%s1124_s1] sm:$0xff]  ;;  %816 = vmatprep.subr.mxu0 %v430_v50  ;;  %s777_s26 = sshll.u32 %s1129_s17, 3 }
   0xd   : > { %s915_s21 = scalar_lea.vmem %s1123_s0, %s797_s18  ;;  %830 = vmatprep.subr.mxu1 %v429_v51  ;;  %817 = vmatpush3.msra.mxu0 %v430_v50  ;;  %s1102_s5 = scalar_lea.vmem %s1127_s4, %s777_s26 }
   0xe   : > { %v918_v0 = vld [vmem:[%s915_s21 + $0x10] sm:$0xff]  ;;  %v921_v1 = vld [vmem:[%s915_s21] sm:$0xff]  ;;  %v924_v2 = vld [vmem:[%s915_s21 + $0x18] sm:$0xff]  ;;  %831 = vmatpush3.msra.mxu1 %v429_v51 }
   0xf   : > { %v224_v3 = vsel %vm220_vm0, %v918_v0, 0.0  ;;  %v221_v4 = vsel %vm220_vm0, %v921_v1, 0.0  ;;  %v931_v5 = vld [vmem:[%s915_s21 + $0x8] sm:$0xff]  ;;  %v248_v6 = vsel %vm220_vm0, %v924_v2, 0.0  ;;  %v277_v9 = vmul.f32 %v921_v1, %v921_v1  ;;  %v953_v17 = vld [vmem:[%s915_s21 + $0x20] sm:$0xff]  ;;  %v960_v20 = vld [vmem:[%s915_s21 + $0x38] sm:$0xff] }
  0x10   : > { %225 = vadd.xlane.f32.xlu1 %v224_v3  ;;  %222 = vadd.xlane.f32.xlu0 %v221_v4  ;;  %v245_v7 = vsel %vm220_vm0, %v931_v5, 0.0  ;;  %v309_v8 = vmul.f32 %v931_v5, %v931_v5  ;;  %v310_v12 = vmul.f32 %v924_v2, %v924_v2  ;;  %v278_v13 = vmul.f32 %v918_v0, %v918_v0  ;;  %v950_v16 = vld [vmem:[%s915_s21 + $0x28] sm:$0xff]  ;;  %v963_v21 = vld [vmem:[%s915_s21 + $0x30] sm:$0xff]  ;;  %v985_v33 = vld [vmem:[%s915_s21 + $0x40] sm:$0xff] }
  0x11   : > { %v285_v11 = vsel %vm220_vm0, %v277_v9, 0.0  ;;  %v251_v18 = vsel %vm220_vm0, %v950_v16, 0.0  ;;  %v227_v19 = vsel %vm220_vm0, %v953_v17, 0.0  ;;  %v254_v22 = vsel %vm220_vm0, %v960_v20, 0.0  ;;  %v982_v32 = vld [vmem:[%s915_s21 + $0x48] sm:$0xff]  ;;  %v992_v36 = vld [vmem:[%s915_s21 + $0x58] sm:$0xff] }
  0x12   : > { %v317_v10 = vsel %vm220_vm0, %v309_v8, 0.0  ;;  %v320_v14 = vsel %vm220_vm0, %v310_v12, 0.0  ;;  %v288_v15 = vsel %vm220_vm0, %v278_v13, 0.0  ;;  %v230_v23 = vsel %vm220_vm0, %v963_v21, 0.0  ;;  %v995_v37 = vld [vmem:[%s915_s21 + $0x50] sm:$0xff]  ;;  %v1014_v48 = vld [vmem:[%s915_s21 + $0x68] sm:$0xff] }
  0x13   : > { %v311_v24 = vmul.f32 %v950_v16, %v950_v16  ;;  %v279_v25 = vmul.f32 %v953_v17, %v953_v17  ;;  %v312_v28 = vmul.f32 %v960_v20, %v960_v20  ;;  %v280_v29 = vmul.f32 %v963_v21, %v963_v21  ;;  %v1017_v49 = vld [vmem:[%s915_s21 + $0x60] sm:$0xff]  ;;  %v1030_v54 = vld [vmem:[%s915_s21 + $0x78] sm:$0xff]  ;;  %v1033_v55 = vld [vmem:[%s915_s21 + $0x70] sm:$0xff] }
  0x14   : > { %249 = vadd.xlane.f32.xlu1 %v248_v6  ;;  %246 = vadd.xlane.f32.xlu0 %v245_v7  ;;  %v257_v34 = vsel %vm220_vm0, %v982_v32, 0.0  ;;  %v233_v35 = vsel %vm220_vm0, %v985_v33, 0.0  ;;  %v260_v38 = vsel %vm220_vm0, %v992_v36, 0.0  ;;  %v236_v39 = vsel %vm220_vm0, %v995_v37, 0.0 }
  0x15   : > { %v323_v26 = vsel %vm220_vm0, %v311_v24, 0.0  ;;  %v291_v27 = vsel %vm220_vm0, %v279_v25, 0.0  ;;  %v326_v30 = vsel %vm220_vm0, %v312_v28, 0.0  ;;  %v294_v31 = vsel %vm220_vm0, %v280_v29, 0.0 }
  0x16   : > { %v313_v40 = vmul.f32 %v982_v32, %v982_v32  ;;  %v281_v41 = vmul.f32 %v985_v33, %v985_v33  ;;  %v314_v44 = vmul.f32 %v992_v36, %v992_v36  ;;  %v282_v45 = vmul.f32 %v995_v37, %v995_v37 }
  0x17   : > { %v263_v52 = vsel %vm220_vm0, %v1014_v48, 0.0  ;;  %v239_v53 = vsel %vm220_vm0, %v1017_v49, 0.0  ;;  %v266_v56 = vsel %vm220_vm0, %v1030_v54, 0.0  ;;  %v242_v57 = vsel %vm220_vm0, %v1033_v55, 0.0 }
  0x18   : > { %318 = vadd.xlane.f32.xlu1 %v317_v10  ;;  %286 = vadd.xlane.f32.xlu0 %v285_v11  ;;  %v329_v42 = vsel %vm220_vm0, %v313_v40, 0.0  ;;  %v297_v43 = vsel %vm220_vm0, %v281_v41, 0.0  ;;  %v332_v46 = vsel %vm220_vm0, %v314_v44, 0.0  ;;  %v300_v47 = vsel %vm220_vm0, %v282_v45, 0.0 }
  0x19   : > { %v315_v58 = vmul.f32 %v1014_v48, %v1014_v48  ;;  %v283_v59 = vmul.f32 %v1017_v49, %v1017_v49  ;;  %v316_v62 = vmul.f32 %v1030_v54, %v1030_v54  ;;  %v284_v63 = vmul.f32 %v1033_v55, %v1033_v55 }
  0x1b   : > { %v335_v60 = vsel %vm220_vm0, %v315_v58, 0.0  ;;  %v303_v61 = vsel %vm220_vm0, %v283_v59, 0.0  ;;  %v338_v3 = vsel %vm220_vm0, %v316_v62, 0.0  ;;  %v306_v4 = vsel %vm220_vm0, %v284_v63, 0.0 }
  0x1c   : > { %321 = vadd.xlane.f32.xlu1 %v320_v14  ;;  %289 = vadd.xlane.f32.xlu0 %v288_v15 }
  0x20   : > { %252 = vadd.xlane.f32.xlu1 %v251_v18  ;;  %228 = vadd.xlane.f32.xlu0 %v227_v19 }
  0x24   : > { %255 = vadd.xlane.f32.xlu1 %v254_v22  ;;  %231 = vadd.xlane.f32.xlu0 %v230_v23 }
  0x28   : > { %324 = vadd.xlane.f32.xlu1 %v323_v26  ;;  %292 = vadd.xlane.f32.xlu0 %v291_v27 }
  0x2c   : > { %327 = vadd.xlane.f32.xlu1 %v326_v30  ;;  %295 = vadd.xlane.f32.xlu0 %v294_v31 }
  0x30   : > { %258 = vadd.xlane.f32.xlu1 %v257_v34  ;;  %234 = vadd.xlane.f32.xlu0 %v233_v35 }
  0x34   : > { %261 = vadd.xlane.f32.xlu1 %v260_v38  ;;  %237 = vadd.xlane.f32.xlu0 %v236_v39 }
  0x38   : > { %330 = vadd.xlane.f32.xlu1 %v329_v42  ;;  %298 = vadd.xlane.f32.xlu0 %v297_v43 }
  0x3c   : > { %333 = vadd.xlane.f32.xlu1 %v332_v46  ;;  %301 = vadd.xlane.f32.xlu0 %v300_v47 }
  0x40   : > { %264 = vadd.xlane.f32.xlu1 %v263_v52  ;;  %240 = vadd.xlane.f32.xlu0 %v239_v53 }
  0x44   : > { %267 = vadd.xlane.f32.xlu1 %v266_v56  ;;  %243 = vadd.xlane.f32.xlu0 %v242_v57 }
  0x48   : > { %336 = vadd.xlane.f32.xlu1 %v335_v60  ;;  %304 = vadd.xlane.f32.xlu0 %v303_v61 }
  0x4c   : > { %339 = vadd.xlane.f32.xlu1 %v338_v3  ;;  %307 = vadd.xlane.f32.xlu0 %v306_v4 }
  0x99   : > { %v226_v6 = vpop.xlane.xlu1 %225  ;;  %v223_v7 = vpop.xlane.xlu0 %222 }
  0x9d   : > { %v250_v8 = vpop.xlane.xlu1 %249  ;;  %v247_v9 = vpop.xlane.xlu0 %246 }
  0x9e   : > { %v269_v10 = vadd.f32 %v247_v9, %v223_v7  ;;  %v270_v11 = vadd.f32 %v250_v8, %v226_v6 }
  0xa0   : > { %v349_v12 = vmul.f32 0.0625, %v269_v10  ;;  %v350_v18 = vmul.f32 0.0625, %v270_v11 }
  0xa1   : > { %v319_v13 = vpop.xlane.xlu1 %318  ;;  %v287_v14 = vpop.xlane.xlu0 %286 }
  0xa2   : > { %v341_v15 = vadd.f32 %v319_v13, %v287_v14  ;;  %v365_v19 = vmul.f32 %v349_v12, %v349_v12  ;;  %v366_v28 = vmul.f32 %v350_v18, %v350_v18  ;;  %v413_v57 = vsub.f32 %v931_v5, %v349_v12 }
  0xa3   : > { %v397_v58 = vsub.f32 %v921_v1, %v349_v12  ;;  %v398_v7 = vsub.f32 %v918_v0, %v350_v18  ;;  %v414_v8 = vsub.f32 %v924_v2, %v350_v18 }
  0xa4   : > { %v357_v22 = vmul.f32 0.0625, %v341_v15 }
  0xa5   : > { %v322_v23 = vpop.xlane.xlu1 %321  ;;  %v290_v24 = vpop.xlane.xlu0 %289 }
  0xa6   : > { %v373_v25 = vsub.f32 %v357_v22, %v365_v19  ;;  %v342_v26 = vadd.f32 %v322_v23, %v290_v24 }
  0xa8   : > { %v381_v27 = vadd.f32 1e-05, %v373_v25  ;;  %v358_v29 = vmul.f32 0.0625, %v342_v26 }
  0xa9   : > { %v253_v30 = vpop.xlane.xlu1 %252  ;;  %v229_v31 = vpop.xlane.xlu0 %228 }
  0xaa   : > { %852 = vrsqrt.f32 %v381_v27  ;;  %v374_v34 = vsub.f32 %v358_v29, %v366_v28  ;;  %v271_v38 = vadd.f32 %v253_v30, %v229_v31 }
  0xac   : > { %v382_v35 = vadd.f32 1e-05, %v374_v34  ;;  %v351_v42 = vmul.f32 0.0625, %v271_v38 }
  0xad   : > { %v256_v39 = vpop.xlane.xlu1 %255  ;;  %v232_v40 = vpop.xlane.xlu0 %231 }
  0xae   : > { %854 = vrsqrt.f32 %v382_v35  ;;  %v272_v41 = vadd.f32 %v256_v39, %v232_v40  ;;  %v367_v47 = vmul.f32 %v351_v42, %v351_v42  ;;  %v399_v27 = vsub.f32 %v953_v17, %v351_v42 }
  0xaf   : > { %v415_v28 = vsub.f32 %v950_v16, %v351_v42 }
  0xb0   : > { %v1051_v46 = vmul.f32 0.0625, %v272_v41 }
  0xb1   : > { %v325_v43 = vpop.xlane.xlu1 %324  ;;  %v293_v44 = vpop.xlane.xlu0 %292 }
  0xb2   : > { %v343_v45 = vadd.f32 %v325_v43, %v293_v44  ;;  %v368_v60 = vmul.f32 %v1051_v46, %v1051_v46  ;;  %v400_v44 = vsub.f32 %v963_v21, %v1051_v46  ;;  %v416_v17 = vsub.f32 %v960_v20, %v1051_v46 }
  0xb4   : > { %v359_v50 = vmul.f32 0.0625, %v343_v45 }
  0xb5   : > { %v328_v51 = vpop.xlane.xlu1 %327  ;;  %v296_v52 = vpop.xlane.xlu0 %295 }
  0xb6   : > { %v375_v53 = vsub.f32 %v359_v50, %v367_v47  ;;  %v344_v56 = vadd.f32 %v328_v51, %v296_v52 }
  0xb7   : > { %v853_v59 = vpop.eup %852 }
  0xb8   : > { %v383_v61 = vadd.f32 1e-05, %v375_v53  ;;  %v360_v62 = vmul.f32 0.0625, %v344_v56  ;;  %v421_v63 = vmul.f32 %v853_v59, %v413_v57  ;;  %v405_v3 = vmul.f32 %v853_v59, %v397_v58 }
  0xb9   : > { %v259_v4 = vpop.xlane.xlu1 %258  ;;  %v235_v6 = vpop.xlane.xlu0 %234 }
  0xba   : > { %856 = vrsqrt.f32 %v383_v61  ;;  %v376_v9 = vsub.f32 %v360_v62, %v368_v60  ;;  %818 = vmatprep.mubr.msk.f32.mxu0 %vm220_vm0, %v421_v63  ;;  %832 = vmatprep.mubr.msk.f32.mxu1 %vm220_vm0, %v405_v3  ;;  %v273_v10 = vadd.f32 %v259_v4, %v235_v6 }
  0xbb   : > { %v855_v1 = vpop.eup %854 }
  0xbc   : > { %v384_v5 = vadd.f32 1e-05, %v376_v9  ;;  %v422_v11 = vmul.f32 %v855_v1, %v414_v8  ;;  %v406_v12 = vmul.f32 %v855_v1, %v398_v7  ;;  %v353_v2 = vmul.f32 0.0625, %v273_v10 }
  0xbd   : > { %v262_v13 = vpop.xlane.xlu1 %261  ;;  %v238_v14 = vpop.xlane.xlu0 %237 }
  0xbe   : > { %858 = vrsqrt.f32 %v384_v5  ;;  %819 = vmatmul.mubr.msk.f32.vlgmr.msra.gmra.mxu0 %vm220_vm0, %v422_v11  ;;  %833 = vmatmul.mubr.msk.f32.vlgmr.msra.gmra.mxu1 %vm220_vm0, %v406_v12  ;;  %v274_v0 = vadd.f32 %v262_v13, %v238_v14  ;;  %v369_v23 = vmul.f32 %v353_v2, %v353_v2  ;;  %v401_v63 = vsub.f32 %v985_v33, %v353_v2 }
  0xbf   : > { %v417_v3 = vsub.f32 %v982_v32, %v353_v2 }
  0xc0   : > { %v1063_v22 = vmul.f32 0.0625, %v274_v0 }
  0xc1   : > { %v331_v15 = vpop.xlane.xlu1 %330  ;;  %v299_v18 = vpop.xlane.xlu0 %298 }
  0xc2   : > { %v345_v19 = vadd.f32 %v331_v15, %v299_v18  ;;  %v370_v34 = vmul.f32 %v1063_v22, %v1063_v22  ;;  %v402_v11 = vsub.f32 %v995_v37, %v1063_v22  ;;  %v418_v12 = vsub.f32 %v992_v36, %v1063_v22 }
  0xc4   : > { %v361_v24 = vmul.f32 0.0625, %v345_v19 }
  0xc5   : > { %v334_v25 = vpop.xlane.xlu1 %333  ;;  %v302_v26 = vpop.xlane.xlu0 %301 }
  0xc6   : > { %v377_v29 = vsub.f32 %v361_v24, %v369_v23  ;;  %v346_v30 = vadd.f32 %v334_v25, %v302_v26 }
  0xc7   : > { %v857_v31 = vpop.eup %856 }
  0xc8   : > { %v385_v35 = vadd.f32 1e-05, %v377_v29  ;;  %v362_v38 = vmul.f32 0.0625, %v346_v30  ;;  %v423_v39 = vmul.f32 %v857_v31, %v415_v28  ;;  %v407_v40 = vmul.f32 %v857_v31, %v399_v27 }
  0xc9   : > { %v265_v41 = vpop.xlane.xlu1 %264  ;;  %v241_v43 = vpop.xlane.xlu0 %240 }
  0xca   : > { %860 = vrsqrt.f32 %v385_v35  ;;  %v378_v16 = vsub.f32 %v362_v38, %v370_v34  ;;  %821 = vmatprep.mubr.msk.f32.mxu0 %vm220_vm0, %v423_v39  ;;  %835 = vmatprep.mubr.msk.f32.mxu1 %vm220_vm0, %v407_v40  ;;  %v275_v47 = vadd.f32 %v265_v41, %v241_v43 }
  0xcb   : > { %v859_v42 = vpop.eup %858 }
  0xcc   : > { %v386_v45 = vadd.f32 1e-05, %v378_v16  ;;  %v424_v50 = vmul.f32 %v859_v42, %v416_v17  ;;  %v408_v51 = vmul.f32 %v859_v42, %v400_v44  ;;  %v355_v20 = vmul.f32 0.0625, %v275_v47 }
  0xcd   : > { %v268_v52 = vpop.xlane.xlu1 %267  ;;  %v244_v53 = vpop.xlane.xlu0 %243 }
  0xce   : > { %862 = vrsqrt.f32 %v386_v45  ;;  %822 = vmatmul.mubr.msk.f32.gmra.mxu0 %vm220_vm0, %v424_v50  ;;  %836 = vmatmul.mubr.msk.f32.gmra.mxu1 %vm220_vm0, %v408_v51  ;;  %v276_v21 = vadd.f32 %v268_v52, %v244_v53  ;;  %v371_v59 = vmul.f32 %v355_v20, %v355_v20  ;;  %v403_v37 = vsub.f32 %v1017_v49, %v355_v20 }
  0xcf   : > { %v419_v36 = vsub.f32 %v1014_v48, %v355_v20 }
  0xd0   : > { %v356_v58 = vmul.f32 0.0625, %v276_v21 }
  0xd1   : > { %v337_v46 = vpop.xlane.xlu1 %336  ;;  %v305_v56 = vpop.xlane.xlu0 %304 }
  0xd2   : > { %v347_v57 = vadd.f32 %v337_v46, %v305_v56  ;;  %v372_v8 = vmul.f32 %v356_v58, %v356_v58  ;;  %v404_v19 = vsub.f32 %v1033_v55, %v356_v58  ;;  %v420_v22 = vsub.f32 %v1030_v54, %v356_v58  ;;  %v794_v55 = vld [vmem:[%s1126_s3] ss:$0 sm:$0xff] }
  0xd4   : > { %v363_v60 = vmul.f32 0.0625, %v347_v57 }
  0xd5   : > { %v340_v61 = vpop.xlane.xlu1 %339  ;;  %v308_v62 = vpop.xlane.xlu0 %307 }
  0xd6   : > { %v379_v4 = vsub.f32 %v363_v60, %v371_v59  ;;  %v348_v6 = vadd.f32 %v340_v61, %v308_v62 }
  0xd7   : > { %v861_v7 = vpop.eup %860 }
  0xd8   : > { %v387_v9 = vadd.f32 1e-05, %v379_v4  ;;  %v364_v1 = vmul.f32 0.0625, %v348_v6  ;;  %v425_v5 = vmul.f32 %v861_v7, %v417_v3  ;;  %v409_v10 = vmul.f32 %v861_v7, %v401_v63 }
  0xda   : > { %864 = vrsqrt.f32 %v387_v9  ;;  %v380_v13 = vsub.f32 %v364_v1, %v372_v8  ;;  %824 = vmatprep.mubr.msk.f32.mxu0 %vm220_vm0, %v425_v5  ;;  %838 = vmatprep.mubr.msk.f32.mxu1 %vm220_vm0, %v409_v10 }
  0xdb   : > { %v863_v32 = vpop.eup %862 }
  0xdc   : > { %v388_v33 = vadd.f32 1e-05, %v380_v13  ;;  %v426_v14 = vmul.f32 %v863_v32, %v418_v12  ;;  %v410_v0 = vmul.f32 %v863_v32, %v402_v11 }
  0xde   : > { %866 = vrsqrt.f32 %v388_v33  ;;  %825 = vmatmul.mubr.msk.f32.gmra.mxu0 %vm220_vm0, %v426_v14  ;;  %839 = vmatmul.mubr.msk.f32.gmra.mxu1 %vm220_vm0, %v410_v0 }
  0xe7   : > { %v865_v2 = vpop.eup %864 }
  0xe8   : > { %v427_v15 = vmul.f32 %v865_v2, %v419_v36  ;;  %v411_v18 = vmul.f32 %v865_v2, %v403_v37 }
  0xea   : > { %827 = vmatprep.mubr.msk.f32.mxu0 %vm220_vm0, %v427_v15  ;;  %841 = vmatprep.mubr.msk.f32.mxu1 %vm220_vm0, %v411_v18 }
  0xeb   : > { %v867_v23 = vpop.eup %866 }
  0xec   : > { %v428_v24 = vmul.f32 %v867_v23, %v420_v22  ;;  %v412_v25 = vmul.f32 %v867_v23, %v404_v19 }
  0xee   : > { %828 = vmatmul.mubr.msk.f32.gmra.mxu0 %vm220_vm0, %v428_v24  ;;  %842 = vmatmul.mubr.msk.f32.gmra.mxu1 %vm220_vm0, %v412_v25 }
 0x17e   : > { %v820_v48 = vpop.f32.mrf.mxu0  ;;  %v834_v49 = vpop.f32.mrf.mxu1 }
 0x17f   : > { %v656_v26 = vadd.f32 %v834_v49, %v820_v48 }
 0x180   : > { %v521_v54 = vpop.f32.mrf.mxu0  ;;  %v650_v27 = vpop.f32.mrf.mxu1 }
 0x181   : > { %v697_v28 = vadd.f32 %v794_v55, %v656_v26  ;;  %v651_v29 = vadd.f32 %v650_v27, %v521_v54 }
 0x183   : > { %705 = vst.msk [vmem:[%s1102_s5 + $0x8] sm:$0xff] %vm220_vm0, %v697_v28  ;;  %v696_v30 = vadd.f32 %v794_v55, %v651_v29 }
 0x185   : > { %704 = vst.msk [vmem:[%s1102_s5] sm:$0xff] %vm220_vm0, %v696_v30 }
 0x18e   : > { %v823_v31 = vpop.f32.mrf.mxu0  ;;  %v837_v34 = vpop.f32.mrf.mxu1 }
 0x18f   : > { %v666_v35 = vadd.f32 %v837_v34, %v823_v31 }
 0x190   : > { %v531_v38 = vpop.f32.mrf.mxu0  ;;  %v660_v39 = vpop.f32.mrf.mxu1 }
 0x191   : > { %v699_v40 = vadd.f32 %v794_v55, %v666_v35  ;;  %v661_v41 = vadd.f32 %v660_v39, %v531_v38 }
 0x193   : > { %707 = vst.msk [vmem:[%s1102_s5 + $0x18] sm:$0xff] %vm220_vm0, %v699_v40  ;;  %v698_v43 = vadd.f32 %v794_v55, %v661_v41 }
 0x195   : > { %706 = vst.msk [vmem:[%s1102_s5 + $0x10] sm:$0xff] %vm220_vm0, %v698_v43 }
 0x19e   : > { %v826_v44 = vpop.f32.mrf.mxu0  ;;  %v840_v17 = vpop.f32.mrf.mxu1 }
 0x19f   : > { %v676_v16 = vadd.f32 %v840_v17, %v826_v44 }
 0x1a0   : > { %v541_v42 = vpop.f32.mrf.mxu0  ;;  %v670_v45 = vpop.f32.mrf.mxu1 }
 0x1a1   : > { %v701_v47 = vadd.f32 %v794_v55, %v676_v16  ;;  %v671_v50 = vadd.f32 %v670_v45, %v541_v42 }
 0x1a3   : > { %709 = vst.msk [vmem:[%s1102_s5 + $0x28] sm:$0xff] %vm220_vm0, %v701_v47  ;;  %v700_v51 = vadd.f32 %v794_v55, %v671_v50 }
 0x1a5   : > { %708 = vst.msk [vmem:[%s1102_s5 + $0x20] sm:$0xff] %vm220_vm0, %v700_v51 }
 0x1ae   : > { %v829_v52 = vpop.f32.mrf.mxu0  ;;  %v843_v53 = vpop.f32.mrf.mxu1 }
 0x1af   : > { %v686_v21 = vadd.f32 %v843_v53, %v829_v52 }
 0x1b0   : > { %v551_v20 = vpop.f32.mrf.mxu0  ;;  %v680_v46 = vpop.f32.mrf.mxu1 }
 0x1b1   : > { %v703_v56 = vadd.f32 %v794_v55, %v686_v21  ;;  %v681_v57 = vadd.f32 %v680_v46, %v551_v20 }
 0x1b3   : > { %711 = vst.msk [vmem:[%s1102_s5 + $0x38] sm:$0xff] %vm220_vm0, %v703_v56  ;;  %v702_v58 = vadd.f32 %v794_v55, %v681_v57 }
 0x1b5   : > { %710 = vst.msk [vmem:[%s1102_s5 + $0x30] sm:$0xff] %vm220_vm0, %v702_v58 }
 0x1b6 PF: > { %s14_s15 = sadd.s32 1, %s874_s15  }
 0x1b7   : > { %p11_p4 = scmp.ge.s32.totalorder %s14_s15, 4  }
 0x1b9   :  { %13 = sbr.rel (!%p11_p4) target bundleno = 1 (0x1), region = 66 }

</bundles_post_ra>
